<compile_context>
chip_gen: v7x
topology: tpu7x:2x2x1
jax: 0.10.0
libtpu: 0.0.40
codegen_flags: <defaults>
</compile_context>

<pallas_src>
import jax
import jax.numpy as jnp
from jax.experimental import pallas as pl
from jax.experimental.pallas import tpu as pltpu

LANE = 128
_TR_MAX = 1024  # rows-of-128 per grid step -> up to 131072 rows / ~3 MiB of z per step


def _poisson_forward_kernel(rate_ref, z_ref, eps_ref, out_ref):
    # rate_ref: (K, 1, 1)    float32  (resident, constant across the grid)
    # z_ref:    (K, TR, 128) z-dtype
    # eps_ref:  (TR, 128)    float32
    # out_ref:  (TR, 128)    float32
    K = z_ref.shape[0]
    # K is tiny and static -> unrolled VPU multiply-add chain (no MXU).
    mu = z_ref[0].astype(jnp.float32) * rate_ref[0]
    for k in range(1, K):
        mu = mu + z_ref[k].astype(jnp.float32) * rate_ref[k]
    # sqrt sits on the EUP slot and hides under the DMA of this HBM-bound kernel.
    # NOTE: mu < 0 (negative z rows) would give NaN, matching the PyTorch code's
    # implicit nonnegativity assumption.
    out_ref[...] = eps_ref[...] * jnp.sqrt(mu) + mu


def _choose_tr(r_total):
    """Rows-of-128 per grid step.

    As large as possible (big DMAs, few grid steps), but split into >= 2 steps
    when feasible so v7x's two TensorCores both get work.  The returned value
    is either a multiple of 8 or the full extent (Mosaic (8,128) block rule).
    """
    if r_total > _TR_MAX:
        return _TR_MAX
    half = -(-r_total // 2)
    half8 = -(-half // 8) * 8
    if 8 <= half8 < r_total:
        return half8
    return r_total


def poisson_forward(z, rate_param, eps):
    """z: [B, L, K], rate_param: [K, 1], eps: [B, L, 1]  ->  x: [B, L] (float32)"""
    B, L, K = z.shape
    M = B * L
    R = -(-M // LANE)          # ceil(M / 128) rows of 128 lanes
    M_pad = R * LANE

    # Parameter glue: exp + sort along last dim (size 1 -> no-op, matches
    # torch.sort's default dim=-1 on a (K, 1) tensor).  Shaped (K, 1, 1) so the
    # kernel can broadcast rate[k] over a (TR, 128) tile with pure VPU ops.
    rate = jnp.sort(jnp.exp(rate_param.astype(jnp.float32)), axis=-1)
    rate = rate.reshape(K, 1, 1)

    # Lane-dense layout for z: one fused transpose+pad copy -> (K, R, 128).
    # z keeps its original dtype (no wrapper-side upcast of the big array).
    zt = jnp.swapaxes(z.reshape(M, K), 0, 1)              # (K, M)
    if M_pad != M:
        zt = jnp.pad(zt, ((0, 0), (0, M_pad - M)))
    zt = zt.reshape(K, R, LANE)

    # eps / out are lane-dense (R, 128); eps is small (M floats) so padding it
    # is cheap.
    eps2 = eps.reshape(M).astype(jnp.float32)
    if M_pad != M:
        eps2 = jnp.pad(eps2, (0, M_pad - M))
    eps2 = eps2.reshape(R, LANE)

    tr = _choose_tr(R)
    grid = (-(-R // tr),)      # Pallas handles a partial last block

    out = pl.pallas_call(
        _poisson_forward_kernel,
        out_shape=jax.ShapeDtypeStruct((R, LANE), jnp.float32),
        grid_spec=pltpu.PrefetchScalarGridSpec(
            num_scalar_prefetch=0,
            grid=grid,
            in_specs=[
                pl.BlockSpec((K, 1, 1), lambda i: (0, 0, 0)),     # rate (resident)
                pl.BlockSpec((K, tr, LANE), lambda i: (0, i, 0)),  # z rows, lane-dense
                pl.BlockSpec((tr, LANE), lambda i: (i, 0)),        # eps rows
            ],
            out_specs=pl.BlockSpec((tr, LANE), lambda i: (i, 0)),
        ),
        compiler_params=pltpu.CompilerParams(
            dimension_semantics=("parallel",),
        ),
    )(rate, zt, eps2)

    return out.reshape(M_pad)[:M].reshape(B, L)


if __name__ == "__main__":
    # Module config: K Poisson rates, uniform init in [s, m].
    K, m, s = 4, 1.0, 0.0
    B, L = 2, 8

    key = jax.random.PRNGKey(0)
    k_param, k_z, k_eps = jax.random.split(key, 3)

    # nn.init.uniform_(torch.empty(K, 1), s, m)  ->  U(low=s, high=m)
    rate_param = jax.random.uniform(
        k_param, (K, 1), dtype=jnp.float32, minval=s, maxval=m
    )

    # z: [B, L, K] (nonnegative mixture/assignment-like weights keep mu >= 0)
    z = jax.random.uniform(k_z, (B, L, K), dtype=jnp.float32)

    # eps ~ N(0, 1), same shape as sigma ([B, L, 1]) -- training-path noise.
    eps = jax.random.normal(k_eps, (B, L, 1), dtype=jnp.float32)

    x = poisson_forward(z, rate_param, eps)
    x = jax.block_until_ready(x)

    # Pure-JAX reference for correctness.
    rate_ref = jnp.sort(jnp.exp(rate_param), axis=-1)
    mu_ref = jnp.matmul(z, rate_ref)
    x_ref = (eps * jnp.sqrt(mu_ref) + mu_ref)[..., 0]
    assert x.shape == (B, L)
    assert jnp.allclose(x, x_ref, atol=1e-5, rtol=1e-5)

    print("KERNEL_OK")
</pallas_src>

<mosaic_0001>
module attributes {stable_mosaic.version = 11 : i64} {
  func.func @_poisson_forward_kernel(%arg0: i32, %arg1: memref<4x1x1xf32, #tpu.memory_space<vmem>>, %arg2: memref<4x1x128xf32, #tpu.memory_space<vmem>>, %arg3: memref<1x128xf32, #tpu.memory_space<vmem>>, %arg4: memref<1x128xf32, #tpu.memory_space<vmem>>) attributes {dimension_semantics = [#tpu.dimension_semantics<parallel>], iteration_bounds = array<i64: 1>, scalar_prefetch = 0 : i64, scratch_operands = 0 : i64, tpu.core_type = #tpu.core_type<tc>, window_params = [{pipeline_mode = #tpu.pipeline_mode<synchronous>, transform_indices = @transform_0, window_bounds = array<i64: 4, 1, 1>}, {transform_indices = @transform_1, window_bounds = array<i64: 4, 1, 128>}, {transform_indices = @transform_2, window_bounds = array<i64: 1, 128>}, {transform_indices = @transform_3, window_bounds = array<i64: 1, 128>}]} {
    %c0 = arith.constant 0 : index
    %c0_0 = arith.constant 0 : index
    %c0_1 = arith.constant 0 : index
    %0 = vector.load %arg2[%c0, %c0_0, %c0_1] : memref<4x1x128xf32, #tpu.memory_space<vmem>>, vector<1x1x128xf32>
    %1 = vector.shape_cast %0 : vector<1x1x128xf32> to vector<1x128xf32>
    %c0_2 = arith.constant 0 : index
    %c0_3 = arith.constant 0 : index
    %c0_4 = arith.constant 0 : index
    %2 = vector.load %arg1[%c0_2, %c0_3, %c0_4] : memref<4x1x1xf32, #tpu.memory_space<vmem>>, vector<1x1x1xf32>
    %3 = vector.shape_cast %2 : vector<1x1x1xf32> to vector<1x1xf32>
    %4 = vector.broadcast %3 : vector<1x1xf32> to vector<1x128xf32>
    %5 = arith.mulf %1, %4 : vector<1x128xf32>
    %c1 = arith.constant 1 : index
    %c0_5 = arith.constant 0 : index
    %c0_6 = arith.constant 0 : index
    %6 = vector.load %arg2[%c1, %c0_5, %c0_6] : memref<4x1x128xf32, #tpu.memory_space<vmem>>, vector<1x1x128xf32>
    %7 = vector.shape_cast %6 : vector<1x1x128xf32> to vector<1x128xf32>
    %c1_7 = arith.constant 1 : index
    %c0_8 = arith.constant 0 : index
    %c0_9 = arith.constant 0 : index
    %8 = vector.load %arg1[%c1_7, %c0_8, %c0_9] : memref<4x1x1xf32, #tpu.memory_space<vmem>>, vector<1x1x1xf32>
    %9 = vector.shape_cast %8 : vector<1x1x1xf32> to vector<1x1xf32>
    %10 = vector.broadcast %9 : vector<1x1xf32> to vector<1x128xf32>
    %11 = arith.mulf %7, %10 : vector<1x128xf32>
    %12 = arith.addf %5, %11 : vector<1x128xf32>
    %c2 = arith.constant 2 : index
    %c0_10 = arith.constant 0 : index
    %c0_11 = arith.constant 0 : index
    %13 = vector.load %arg2[%c2, %c0_10, %c0_11] : memref<4x1x128xf32, #tpu.memory_space<vmem>>, vector<1x1x128xf32>
    %14 = vector.shape_cast %13 : vector<1x1x128xf32> to vector<1x128xf32>
    %c2_12 = arith.constant 2 : index
    %c0_13 = arith.constant 0 : index
    %c0_14 = arith.constant 0 : index
    %15 = vector.load %arg1[%c2_12, %c0_13, %c0_14] : memref<4x1x1xf32, #tpu.memory_space<vmem>>, vector<1x1x1xf32>
    %16 = vector.shape_cast %15 : vector<1x1x1xf32> to vector<1x1xf32>
    %17 = vector.broadcast %16 : vector<1x1xf32> to vector<1x128xf32>
    %18 = arith.mulf %14, %17 : vector<1x128xf32>
    %19 = arith.addf %12, %18 : vector<1x128xf32>
    %c3 = arith.constant 3 : index
    %c0_15 = arith.constant 0 : index
    %c0_16 = arith.constant 0 : index
    %20 = vector.load %arg2[%c3, %c0_15, %c0_16] : memref<4x1x128xf32, #tpu.memory_space<vmem>>, vector<1x1x128xf32>
    %21 = vector.shape_cast %20 : vector<1x1x128xf32> to vector<1x128xf32>
    %c3_17 = arith.constant 3 : index
    %c0_18 = arith.constant 0 : index
    %c0_19 = arith.constant 0 : index
    %22 = vector.load %arg1[%c3_17, %c0_18, %c0_19] : memref<4x1x1xf32, #tpu.memory_space<vmem>>, vector<1x1x1xf32>
    %23 = vector.shape_cast %22 : vector<1x1x1xf32> to vector<1x1xf32>
    %24 = vector.broadcast %23 : vector<1x1xf32> to vector<1x128xf32>
    %25 = arith.mulf %21, %24 : vector<1x128xf32>
    %26 = arith.addf %19, %25 : vector<1x128xf32>
    %c0_20 = arith.constant 0 : index
    %c0_21 = arith.constant 0 : index
    %27 = vector.load %arg3[%c0_20, %c0_21] : memref<1x128xf32, #tpu.memory_space<vmem>>, vector<1x128xf32>
    %28 = math.sqrt %26 : vector<1x128xf32>
    %29 = arith.mulf %27, %28 : vector<1x128xf32>
    %30 = arith.addf %29, %26 : vector<1x128xf32>
    %c0_22 = arith.constant 0 : index
    %c0_23 = arith.constant 0 : index
    %31 = vector.load %arg4[%c0_22, %c0_23] : memref<1x128xf32, #tpu.memory_space<vmem>>, vector<1x128xf32>
    tpu.vector_store %arg4[%c0_22, %c0_23], %30 {strides = array<i32>} : memref<1x128xf32, #tpu.memory_space<vmem>>, vector<1x128xf32>,
    return
  }
  func.func @transform_0(%arg0: i32) -> (i32, i32, i32) {
    %c0_i32 = arith.constant 0 : i32
    %c0_i32_0 = arith.constant 0 : i32
    %c0_i32_1 = arith.constant 0 : i32
    %c0_i32_2 = arith.constant 0 : i32
    return %c0_i32, %c0_i32_0, %c0_i32_1 : i32, i32, i32
  }
  func.func @transform_1(%arg0: i32) -> (i32, i32, i32) {
    %c0_i32 = arith.constant 0 : i32
    %c0_i32_0 = arith.constant 0 : i32
    %c0_i32_1 = arith.constant 0 : i32
    return %c0_i32, %arg0, %c0_i32_0 : i32, i32, i32
  }
  func.func @transform_2(%arg0: i32) -> (i32, i32) {
    %c0_i32 = arith.constant 0 : i32
    %c0_i32_0 = arith.constant 0 : i32
    return %arg0, %c0_i32 : i32, i32
  }
  func.func @transform_3(%arg0: i32) -> (i32, i32) {
    %c0_i32 = arith.constant 0 : i32
    %c0_i32_0 = arith.constant 0 : i32
    return %arg0, %c0_i32 : i32, i32
  }
}

</mosaic_0001>

<bundles_post_ra>
// kernel: tpu_custom_call.1
= control target key start
LH: loop header
LB: loop body
LE: loop exit
PB: predicated region body
PF: predicated region fallthrough
CT: control target
= control target key end

     0   :  { %v133_v2 = vmov 0   ;;  %s194_s0 = inlined_call_operand.vmem [shape: f32[4,1,1], index: 0, kind: input, shape index: {}]   ;;  %s195_s1 = inlined_call_operand.vmem [shape: f32[4,1,128], index: 1, kind: input, shape index: {}]   ;;  %s196_s2 = inlined_call_operand.vmem [shape: f32[1,128], index: 2, kind: input, shape index: {}]   ;;  %s197_s3 = inlined_call_operand.hbm [shape: f32[1,128], index: 3, kind: output, shape index: {}]  }
   0x1   :  { %v100_v0 = vld [vmem:[%s194_s0 + $0x2] sm:$0x1]  ;;  %v16_v1 = vld [vmem:[%s194_s0] sm:$0x1]  ;;  %106 = vset.pattern.permute.xlu1 %v133_v2  ;;  %105 = vset.pattern.permute.xlu0 %v133_v2 }
   0x2   :  { %48 = vperm.xlu1 %106, %v100_v0   ;;  %19 = vperm.xlu0 %105, %v16_v1  }
   0x3   :  { %8 = vsyncpa [#allocation3], 0  ;;  %v102_v3 = vld [vmem:[%s194_s0 + $0x3] sm:$0x1]  ;;  %v98_v4 = vld [vmem:[%s194_s0 + $0x1] sm:$0x1]  ;;  %v22_v5 = vlaneseq }
   0x4   :  { %v15_v11 = vld [vmem:[%s195_s1] sm:$0x1]  ;;  %v97_v13 = vld [vmem:[%s195_s1 + $0x1] sm:$0x1]  ;;  %v99_v17 = vld [vmem:[%s195_s1 + $0x2] sm:$0x1] }
   0x5   :  { %v23_v6 = vshrl.u32 %v22_v5, 7  ;;  %v101_v21 = vld [vmem:[%s195_s1 + $0x3] sm:$0x1]  ;;  %v72_v29 = vld [vmem:[%s196_s2] sm:$0x1]  ;;  %s134_s29 = smov [#allocation2]  }
   0x6   :  { %63 = vperm.xlu1 %106, %v102_v3   ;;  %33 = vperm.xlu0 %105, %v98_v4   ;;  %s89_s30 = sshll.u32 %s134_s29, 4  ;;  %s90_s30 = int_to_ptr.vmem [resolvable:$true] %s89_s30 }
   0x7   :  { %v24_v7 = vsub.s32 0, %v23_v6  ;;  %s109_s1 = scalar_lea.vmem %s90_s30, 16  ;;  %s113_s4 = scalar_lea.vmem %s90_s30, 32 }
   0x8   :  { %p110_p0 = scmp.ne.s32.totalorder %s90_s30, %s109_s1  ;;  %p114_p1 = scmp.lt.s32.totalorder %s90_s30, %s90_s30 }
   0x9   :  { %p115_p2 = scmp.lt.s32.totalorder %s113_s4, %s109_s1 }
   0xb   :  { %p116_p3 = por %p115_p2, %p114_p1 }
   0xd   :  { %p117_p4 = pnand %p116_p3, %p110_p0 }
  0x81   :  { %v49_v8 = vpop.permute.xlu1 %48  ;;  %v20_v9 = vpop.permute.xlu0 %19 }
  0x82   :  { %v25_v10 = vrot.slane %v20_v9, %v24_v7  ;;  %v54_v15 = vrot.slane %v49_v8, %v24_v7 }
  0x84   :  { %v26_v18 = vmul.f32 %v25_v10, %v15_v11  ;;  %v55_v22 = vmul.f32 %v99_v17, %v54_v15 }
  0x85   :  { %v64_v12 = vpop.permute.xlu1 %63  ;;  %v34_v14 = vpop.permute.xlu0 %33 }
  0x86   :  { %v39_v16 = vrot.slane %v34_v14, %v24_v7  ;;  %v69_v19 = vrot.slane %v64_v12, %v24_v7 }
  0x88   :  { %v40_v20 = vmul.f32 %v97_v13, %v39_v16  ;;  %v70_v24 = vmul.f32 %v101_v21, %v69_v19 }
  0x8a   :  { %v41_v23 = vadd.f32 %v40_v20, %v26_v18 }
  0x8c   :  { %v56_v25 = vadd.f32 %v55_v22, %v41_v23 }
  0x8e   :  { %v71_v26 = vadd.f32 %v70_v24, %v56_v25 }
  0x90   :  { %107 = vrsqrt.f32 %v71_v26  ;;  %vm75_vm0 = vcmp.eq.f32.partialorder %v71_v26, inf  ;;  %v78_v30 = vand.u32 2147483648, %v71_v26  ;;  %vm77_vm1 = vcmp.eq.f32.partialorder %v71_v26, 0.0 }
  0x9a   :  { %v108_v27 = vpop.eup %107 }
  0x9b   :  { %v74_v28 = vmul.f32 %v108_v27, %v71_v26 }
  0x9d   :  { %v76_v31 = vsel %vm75_vm0, %v71_v26, %v74_v28 }
  0x9e   :  { %v79_v32 = vsel %vm77_vm1, %v78_v30, %v76_v31 }
  0x9f   :  { %v80_v33 = vmul.f32 %v79_v32, %v72_v29 }
  0xa1   :  { %v81_v34 = vadd.f32 %v80_v33, %v71_v26 }
  0xa3   :  { %82 = vst [vmem:[#allocation2] sm:$0x1] %v81_v34 }
  0xa4   :  { %120 = shalt.err (!%p117_p4)
}
  0xa5   :  { %s121_s6 = scalar_lea.hbm %s197_s3, 16 }
  0xa6   :  { %p122_p5 = scmp.ne.s32.totalorder %s197_s3, %s121_s6  ;;  %p125_p6 = scmp.lt.u32.totalorder %s121_s6, %s197_s3 }
  0xa8   :  { %p127_p7 = pnand %p125_p6, %p122_p5 }
  0xaa   :  { %130 = shalt.err (!%p127_p7)
}
  0xab   :  { %92 = dma.vmem_to_hbm [thread:$0]  %s90_s30, 16, %s197_s3, [#allocation3]  }
  0xac   :  { %131 = dma.done.wait [#allocation3], 16  }
  0xad   :  { %132 = vsyncadd [#allocation3], 4294967280 }
  0xae   :  { %96 = vsyncpa [#allocation3], 1 }

</bundles_post_ra>
